<compile_context>
chip_gen: v5e
topology: v5e:2x2
jax: 0.10.0
libtpu: 0.0.40
codegen_flags: <defaults>
</compile_context>

<pallas_src>
import functools

import jax
import jax.numpy as jnp
from jax.experimental import pallas as pl
from jax.experimental.pallas import tpu as pltpu


def _round_up(x, m):
    return ((x + m - 1) // m) * m


# ---------------------------------------------------------------------------
# Data-parallel tiled linear: y = x @ w + b
# Used for (a) the hoisted input projection over ALL timesteps and
# (b) the final FC projection (outside the recurrence, tiled over V lanes).
# ---------------------------------------------------------------------------
def linear_kernel(x_ref, w_ref, b_ref, o_ref):
    o_ref[...] = (
        jnp.dot(x_ref[...], w_ref[...], preferred_element_type=jnp.float32)
        + b_ref[...]
    ).astype(o_ref.dtype)


def pallas_linear(x, w, b):
    """x: [M, K], w: [K, N], b: [1, N] -> [M, N] (float32)."""
    M, K = x.shape
    Kw, N = w.shape
    assert K == Kw

    # Row tile (sublane-aligned) and column tile (lane-aligned).
    M8 = _round_up(M, 8)
    tm = M8 if M8 <= 512 else 512
    M_p = _round_up(M, tm)
    N128 = _round_up(N, 128)
    tn = N128 if N128 <= 512 else 512
    N_p = _round_up(N, tn)

    x_p = jnp.pad(x, ((0, M_p - M), (0, 0)))
    w_p = jnp.pad(w, ((0, 0), (0, N_p - N)))
    b_p = jnp.pad(b, ((0, 0), (0, N_p - N)))

    out = pl.pallas_call(
        linear_kernel,
        out_shape=jax.ShapeDtypeStruct((M_p, N_p), jnp.float32),
        grid_spec=pltpu.PrefetchScalarGridSpec(
            num_scalar_prefetch=0,
            grid=(M_p // tm, N_p // tn),
            in_specs=[
                pl.BlockSpec((tm, K), lambda i, j: (i, 0)),   # x row tile
                pl.BlockSpec((K, tn), lambda i, j: (0, j)),   # w col tile
                pl.BlockSpec((1, tn), lambda i, j: (0, j)),   # bias col tile
            ],
            out_specs=pl.BlockSpec((tm, tn), lambda i, j: (i, j)),
        ),
        compiler_params=pltpu.CompilerParams(
            dimension_semantics=("parallel", "parallel"),
        ),
    )(x_p, w_p, b_p)
    return out[:M, :N]


# ---------------------------------------------------------------------------
# Sequential recurrence over time, chunked: each grid step consumes Tc
# timesteps of the precomputed input projection and runs an unrolled loop
#     h = tanh(xh[t] + h @ W_hh^T)
# Hidden state persists in VMEM scratch across grid steps; only the last
# hidden state is written out.
# ---------------------------------------------------------------------------
def rnn_scan_kernel(xh_ref, w_hh_ref, h_last_ref, h_scratch, *, seq_len):
    c = pl.program_id(0)
    time_chunk = xh_ref.shape[0]

    @pl.when(c == 0)
    def _():
        # PyTorch nn.RNN default initial hidden state is zeros.
        h_scratch[...] = jnp.zeros_like(h_scratch)

    w_hh = w_hh_ref[...]

    def step(i, h):
        t = c * time_chunk + i
        h_new = jnp.tanh(
            xh_ref[i] + jnp.dot(h, w_hh, preferred_element_type=jnp.float32)
        )
        # Mask out padded timesteps (only relevant when T % Tc != 0).
        return jnp.where(t < seq_len, h_new, h)

    h = jax.lax.fori_loop(0, time_chunk, step, h_scratch[...], unroll=True)
    h_scratch[...] = h

    @pl.when(c == pl.num_programs(0) - 1)
    def _():
        h_last_ref[...] = h.astype(h_last_ref.dtype)


def rnn_model_forward(x_ids, params, *, time_chunk=32):
    """x_ids: [B, T] int32 token ids. Returns logits [B, V] (float32)."""
    emb_table = params["embedding"]          # [V, E]
    w_ih_t = params["w_ih_t"]                # [E, H]
    w_hh_t = params["w_hh_t"]                # [H, H]
    b_ih = params["b_ih"]                    # [1, H]
    b_hh = params["b_hh"]                    # [1, H]
    w_fc_t = params["w_fc_t"]                # [H, V]
    b_fc = params["b_fc"]                    # [1, V]

    B, T = x_ids.shape
    V, E = emb_table.shape
    H = w_hh_t.shape[0]

    # Hardware-granule padding: batch -> sublanes (8), hidden -> lanes (128).
    B_p = _round_up(B, 8)
    H_p = _round_up(H, 128)

    w_ih_p = jnp.pad(w_ih_t, ((0, 0), (0, H_p - H)))
    w_hh_p = jnp.pad(w_hh_t, ((0, H_p - H), (0, H_p - H)))
    b_sum_p = jnp.pad(b_ih + b_hh, ((0, 0), (0, H_p - H)))   # biases pre-summed
    w_fc_p = jnp.pad(w_fc_t, ((0, H_p - H), (0, 0)))         # V padded inside pallas_linear

    # Glue: embedding gather, time-major layout, batch padded.
    embedded = jnp.take(emb_table, x_ids, axis=0)            # [B, T, E]
    embedded = jnp.transpose(embedded, (1, 0, 2))            # [T, B, E]
    embedded = jnp.pad(embedded, ((0, 0), (0, B_p - B), (0, 0)))   # [T, B_p, E]

    # (1) Hoisted input projection for ALL timesteps: one big parallel matmul.
    xh = pallas_linear(embedded.reshape(T * B_p, E), w_ih_p, b_sum_p)
    xh = xh.reshape(T, B_p, H_p)

    # (2) Recurrence, chunked over the time axis.
    Tc = min(time_chunk, T)
    T_p = _round_up(T, Tc)
    xh = jnp.pad(xh, ((0, T_p - T), (0, 0), (0, 0)))

    h_last = pl.pallas_call(
        functools.partial(rnn_scan_kernel, seq_len=T),
        out_shape=jax.ShapeDtypeStruct((B_p, H_p), jnp.float32),
        grid_spec=pltpu.PrefetchScalarGridSpec(
            num_scalar_prefetch=0,
            grid=(T_p // Tc,),
            in_specs=[
                pl.BlockSpec((Tc, B_p, H_p), lambda c: (c, 0, 0)),  # xh chunk
                pl.BlockSpec((H_p, H_p), lambda c: (0, 0)),         # W_hh^T (resident)
            ],
            out_specs=pl.BlockSpec((B_p, H_p), lambda c: (0, 0)),
            scratch_shapes=[pltpu.VMEM((B_p, H_p), jnp.float32)],
        ),
        compiler_params=pltpu.CompilerParams(
            dimension_semantics=("arbitrary",),   # sequential recurrence in time
        ),
    )(xh, w_hh_p)

    # (3) FC projection outside the recurrent kernel, tiled over V lanes.
    logits = pallas_linear(h_last, w_fc_p, b_fc)   # [B_p, V]
    return logits[:B, :]


def init_params(key, vocab_size, embedding_dim, hidden_dim):
    ks = jax.random.split(key, 7)
    scale = 0.1
    return {
        "embedding": scale * jax.random.normal(ks[0], (vocab_size, embedding_dim), jnp.float32),
        # PyTorch stores W_ih as [H, E]; we keep the transposed [E, H] form.
        "w_ih_t": scale * jax.random.normal(ks[1], (embedding_dim, hidden_dim), jnp.float32),
        "w_hh_t": scale * jax.random.normal(ks[2], (hidden_dim, hidden_dim), jnp.float32),
        "b_ih": scale * jax.random.normal(ks[3], (1, hidden_dim), jnp.float32),
        "b_hh": scale * jax.random.normal(ks[4], (1, hidden_dim), jnp.float32),
        # PyTorch fc weight is [V, H]; we keep [H, V].
        "w_fc_t": scale * jax.random.normal(ks[5], (hidden_dim, vocab_size), jnp.float32),
        "b_fc": scale * jax.random.normal(ks[6], (1, vocab_size), jnp.float32),
    }


def reference_forward(x_ids, params):
    """Pure-JAX reference mirroring the PyTorch forward (for sanity check)."""
    emb = jnp.take(params["embedding"], x_ids, axis=0)    # [B, T, E]
    B, T, E = emb.shape
    H = params["w_hh_t"].shape[0]
    h = jnp.zeros((B, H), jnp.float32)
    for t in range(T):
        h = jnp.tanh(emb[:, t, :] @ params["w_ih_t"] + params["b_ih"]
                     + h @ params["w_hh_t"] + params["b_hh"])
    return h @ params["w_fc_t"] + params["b_fc"]


if __name__ == "__main__":
    vocab_size, embedding_dim, hidden_dim = 32, 16, 32
    B, T = 2, 8

    key = jax.random.PRNGKey(0)
    pkey, xkey = jax.random.split(key)
    params = init_params(pkey, vocab_size, embedding_dim, hidden_dim)
    x_ids = jax.random.randint(xkey, (B, T), 0, vocab_size, dtype=jnp.int32)

    out = jax.block_until_ready(rnn_model_forward(x_ids, params))
    ref = jax.block_until_ready(reference_forward(x_ids, params))

    assert out.shape == (B, vocab_size)
    assert jnp.allclose(out, ref, atol=1e-5, rtol=1e-5), "mismatch vs reference"
    print("KERNEL_OK")
</pallas_src>

<mosaic_0001>
module attributes {stable_mosaic.version = 11 : i64} {
  func.func @linear_kernel(%arg0: i32, %arg1: i32, %arg2: memref<64x16xf32, #tpu.memory_space<vmem>>, %arg3: memref<16x128xf32, #tpu.memory_space<vmem>>, %arg4: memref<1x128xf32, #tpu.memory_space<vmem>>, %arg5: memref<64x128xf32, #tpu.memory_space<vmem>>) attributes {dimension_semantics = [#tpu.dimension_semantics<parallel>, #tpu.dimension_semantics<parallel>], iteration_bounds = array<i64: 1, 1>, scalar_prefetch = 0 : i64, scratch_operands = 0 : i64, tpu.core_type = #tpu.core_type<tc>, window_params = [{transform_indices = @transform_0, window_bounds = array<i64: 64, 16>}, {transform_indices = @transform_1, window_bounds = array<i64: 16, 128>}, {transform_indices = @transform_2, window_bounds = array<i64: 1, 128>}, {transform_indices = @transform_3, window_bounds = array<i64: 64, 128>}]} {
    %c0 = arith.constant 0 : index
    %c0_0 = arith.constant 0 : index
    %0 = vector.load %arg2[%c0, %c0_0] : memref<64x16xf32, #tpu.memory_space<vmem>>, vector<64x16xf32>
    %c0_1 = arith.constant 0 : index
    %c0_2 = arith.constant 0 : index
    %1 = vector.load %arg3[%c0_1, %c0_2] : memref<16x128xf32, #tpu.memory_space<vmem>>, vector<16x128xf32>
    %cst = arith.constant dense<0.000000e+00> : vector<64x128xf32>
    %2 = tpu.matmul %0, %1, %cst {dimension_numbers = #tpu.dot_dimension_numbers<[1], [0], [0], [1], [0, 0, 1, 1], [], []>} : vector<64x16xf32>, vector<16x128xf32>, vector<64x128xf32> -> vector<64x128xf32>
    %c0_3 = arith.constant 0 : index
    %c0_4 = arith.constant 0 : index
    %3 = vector.load %arg4[%c0_3, %c0_4] : memref<1x128xf32, #tpu.memory_space<vmem>>, vector<1x128xf32>
    %4 = vector.broadcast %3 : vector<1x128xf32> to vector<64x128xf32>
    %5 = arith.addf %2, %4 : vector<64x128xf32>
    %c0_5 = arith.constant 0 : index
    %c0_6 = arith.constant 0 : index
    %6 = vector.load %arg5[%c0_5, %c0_6] : memref<64x128xf32, #tpu.memory_space<vmem>>, vector<64x128xf32>
    tpu.vector_store %arg5[%c0_5, %c0_6], %5 {strides = array<i32>} : memref<64x128xf32, #tpu.memory_space<vmem>>, vector<64x128xf32>,
    return
  }
  func.func @transform_0(%arg0: i32, %arg1: i32) -> (i32, i32) {
    %c0_i32 = arith.constant 0 : i32
    %c0_i32_0 = arith.constant 0 : i32
    return %arg0, %c0_i32 : i32, i32
  }
  func.func @transform_1(%arg0: i32, %arg1: i32) -> (i32, i32) {
    %c0_i32 = arith.constant 0 : i32
    %c0_i32_0 = arith.constant 0 : i32
    return %c0_i32, %arg1 : i32, i32
  }
  func.func @transform_2(%arg0: i32, %arg1: i32) -> (i32, i32) {
    %c0_i32 = arith.constant 0 : i32
    %c0_i32_0 = arith.constant 0 : i32
    return %c0_i32, %arg1 : i32, i32
  }
  func.func @transform_3(%arg0: i32, %arg1: i32) -> (i32, i32) {
    %c0_i32 = arith.constant 0 : i32
    return %arg0, %arg1 : i32, i32
  }
}

</mosaic_0001>

<bundles_post_ra>
// kernel: tpu_custom_call.1
= control target key start
LH: loop header
LB: loop body
LE: loop exit
PB: predicated region body
PF: predicated region fallthrough
CT: control target
= control target key end

     0   :  { %vm29_vm0 = vcmask 130048   ;;  %s232_s0 = inlined_call_operand.vmem [shape: f32[64,16], index: 0, kind: input, shape index: {}]   ;;  %s233_s1 = inlined_call_operand.vmem [shape: f32[16,128], index: 1, kind: input, shape index: {}]   ;;  %s234_s2 = inlined_call_operand.vmem [shape: f32[1,128], index: 2, kind: input, shape index: {}]   ;;  %s235_s3 = inlined_call_operand.hbm [shape: f32[64,128], index: 3, kind: output, shape index: {}]  }
   0x1   :  { %v24_v0 = vld [vmem:[%s233_s1 + $0x8] sm:$0xff]  ;;  %v23_v1 = vld [vmem:[%s233_s1] sm:$0xff]  ;;  %v21_v3 = vld [vmem:[%s232_s0 + $0x30] sm:$0xff] }
   0x2   :  { %130 = vmatpush.msra.mxu2 %v24_v0  ;;  %131 = vmatpush.msra.mxu3 %v24_v0  ;;  %v19_v2 = vld [vmem:[%s232_s0 + $0x20] sm:$0xff]  ;;  %v17_v5 = vld [vmem:[%s232_s0 + $0x10] sm:$0xff] }
   0x3   :  { %68 = vmatpush.msra.mxu0 %v24_v0  ;;  %129 = vmatpush.msra.mxu1 %v24_v0  ;;  %v15_v4 = vld [vmem:[%s232_s0] sm:$0xff] }
   0x4   :  { %133 = vmatpush.msra.mxu2 %v23_v1  ;;  %134 = vmatpush.msra.mxu3 %v23_v1 }
   0x5   :  { %125 = vmatmul.msk.f32.vlgmr.msra.gmra.mxu2 %vm29_vm0, %v19_v2  ;;  %127 = vmatmul.msk.f32.vlgmr.msra.gmra.mxu3 %vm29_vm0, %v21_v3 }
   0x6   :  { %8 = vsyncpa [#allocation3], 0  ;;  %69 = vmatpush.msra.mxu0 %v23_v1  ;;  %132 = vmatpush.msra.mxu1 %v23_v1  ;;  %v20_v6 = vld [vmem:[%s232_s0 + $0x28] sm:$0xff]  ;;  %v22_v7 = vld [vmem:[%s232_s0 + $0x38] sm:$0xff]  ;;  %s109_s8 = sshll.u32 %s235_s3, 4  ;;  %s166_s9 = smov 128   ;;  %s110_s8 = int_to_ptr.hbm [resolvable:$true] %s109_s8 }
   0x7   :  { %121 = vmatmul.msk.f32.vlgmr.msra.gmra.mxu0 %vm29_vm0, %v15_v4  ;;  %123 = vmatmul.msk.f32.vlgmr.msra.gmra.mxu1 %vm29_vm0, %v17_v5  ;;  %v16_v8 = vld [vmem:[%s232_s0 + $0x8] sm:$0xff]  ;;  %v18_v9 = vld [vmem:[%s232_s0 + $0x18] sm:$0xff]  ;;  %v138_v10 = vld [vmem:[%s234_s2] ss:$0 sm:$0xff]  ;;  %s165_s0 = smov [#allocation2]   ;;  %s167_s10 = smov 8  }
   0x8   :  { %s107_s6 = sshll.u32 %s165_s0, 4  ;;  %s108_s6 = int_to_ptr.vmem [resolvable:$true] %s107_s6 }
   0xd   :  { %126 = vmatmul.msk.f32.gmra.mxu2 %vm29_vm0, %v20_v6  ;;  %128 = vmatmul.msk.f32.gmra.mxu3 %vm29_vm0, %v22_v7 }
   0xf   :  { %122 = vmatmul.msk.f32.gmra.mxu0 %vm29_vm0, %v16_v8  ;;  %124 = vmatmul.msk.f32.gmra.mxu1 %vm29_vm0, %v18_v9 }
  0x84   :  { %v71_v11 = vpop.f32.mrf.mxu0  ;;  %v77_v12 = vpop.f32.mrf.mxu1 }
  0x85   :  { %v72_v13 = vadd.f32 %v138_v10, %v71_v11  ;;  %v78_v14 = vadd.f32 %v138_v10, %v77_v12 }
  0x87   :  { %95 = vst [vmem:[#allocation2] sm:$0xff] %v72_v13 }
  0x88   :  { %97 = vst [vmem:[#allocation2 + $0x10] sm:$0xff] %v78_v14  ;;  %v83_v15 = vpop.f32.mrf.mxu2  ;;  %v89_v16 = vpop.f32.mrf.mxu3 }
  0x89   :  { %v84_v17 = vadd.f32 %v138_v10, %v83_v15  ;;  %v90_v18 = vadd.f32 %v138_v10, %v89_v16 }
  0x8b   :  { %99 = vst [vmem:[#allocation2 + $0x20] sm:$0xff] %v84_v17 }
  0x8c   :  { %101 = vst [vmem:[#allocation2 + $0x30] sm:$0xff] %v90_v18  ;;  %v74_v19 = vpop.f32.mrf.mxu0  ;;  %v80_v20 = vpop.f32.mrf.mxu1 }
  0x8d   :  { %v75_v21 = vadd.f32 %v138_v10, %v74_v19  ;;  %v81_v22 = vadd.f32 %v138_v10, %v80_v20 }
  0x8f   :  { %96 = vst [vmem:[#allocation2 + $0x8] sm:$0xff] %v75_v21 }
  0x90   :  { %98 = vst [vmem:[#allocation2 + $0x18] sm:$0xff] %v81_v22  ;;  %v86_v23 = vpop.f32.mrf.mxu2  ;;  %v92_v24 = vpop.f32.mrf.mxu3 }
  0x91   :  { %v87_v25 = vadd.f32 %v138_v10, %v86_v23  ;;  %v93_v26 = vadd.f32 %v138_v10, %v92_v24 }
  0x93   :  { %100 = vst [vmem:[#allocation2 + $0x28] sm:$0xff] %v87_v25 }
  0x94   :  { %102 = vst [vmem:[#allocation2 + $0x38] sm:$0xff] %v93_v26 }
  0x95   :  { %115 = dma.vmem_to_hbm [thread:$0]  %s108_s6, 1024, %s110_s8, [#allocation3], %s166_s9, %s166_s9, %s167_s10  }
  0x96   :  { %163 = dma.done.wait [#allocation3], 1024  }
  0x97   :  { %164 = vsyncadd [#allocation3], 4294966272 }
  0x98   :  { %120 = vsyncpa [#allocation3], 1 }

</bundles_post_ra>
